<compile_context>
chip_gen: v7x
topology: tpu7x:2x2x1
jax: 0.10.0
libtpu: 0.0.40
codegen_flags: <defaults>
</compile_context>

<pallas_src>
import jax
import jax.numpy as jnp
from jax.experimental import pallas as pl
from jax.experimental.pallas import tpu as pltpu

IN_FEATURES = 10
OUT_FEATURES = 5

TILE_B_MAX = 4096   # batch rows per grid step (multiple of 8 for f32 sublanes)


def _round_up(n: int, m: int) -> int:
    return ((n + m - 1) // m) * m


def linear_kernel(x_ref, w_ref, b_ref, o_ref):
    # y = x @ W + b : MXU matmul into an f32 accumulator, VPU bias add,
    # single store of the tile.  w/b blocks are grid-invariant (VMEM resident).
    acc = jnp.dot(x_ref[...], w_ref[...], preferred_element_type=jnp.float32)
    o_ref[...] = (acc + b_ref[...]).astype(o_ref.dtype)


def linear_pallas(x, w, b):
    """x: (..., IN_FEATURES) f32; w: (IN_FEATURES, OUT_FEATURES); b: (1, OUT_FEATURES).

    Returns (..., OUT_FEATURES), identical to nn.Linear(10, 5) forward.
    """
    lead_shape = x.shape[:-1]
    x2 = x.reshape(-1, IN_FEATURES)
    B = x2.shape[0]

    tile_b = min(TILE_B_MAX, _round_up(B, 8))
    grid = (pl.cdiv(B, tile_b),)

    cost = pl.CostEstimate(
        flops=2 * B * IN_FEATURES * OUT_FEATURES,
        transcendentals=0,
        bytes_accessed=4 * (B * IN_FEATURES
                            + IN_FEATURES * OUT_FEATURES
                            + OUT_FEATURES
                            + B * OUT_FEATURES),
    )

    out = pl.pallas_call(
        linear_kernel,
        out_shape=jax.ShapeDtypeStruct((B, OUT_FEATURES), x.dtype),
        grid_spec=pltpu.PrefetchScalarGridSpec(
            num_scalar_prefetch=0,
            grid=grid,
            in_specs=[
                # x: one batch tile per grid step; last dim = full array extent.
                pl.BlockSpec((tile_b, IN_FEATURES), lambda i: (i, 0)),
                # w, b: same block every step -> stay resident in VMEM.
                pl.BlockSpec((IN_FEATURES, OUT_FEATURES), lambda i: (0, 0)),
                pl.BlockSpec((1, OUT_FEATURES), lambda i: (0, 0)),
            ],
            out_specs=pl.BlockSpec((tile_b, OUT_FEATURES), lambda i: (i, 0)),
        ),
        compiler_params=pltpu.CompilerParams(
            dimension_semantics=("parallel",),
        ),
        cost_estimate=cost,
    )(x2, w, b)

    return out.reshape(*lead_shape, OUT_FEATURES)


def init_params(key):
    """Deterministic synthetic init mimicking nn.Linear(10, 5).

    PyTorch stores weight as (out, in); we pre-transpose once here to
    (in, out) so the kernel matmul needs no in-kernel transpose.
    Returns (w, b) with shapes (IN_FEATURES, OUT_FEATURES) and (1, OUT_FEATURES).
    """
    kw, kb = jax.random.split(key)
    bound = 1.0 / (IN_FEATURES ** 0.5)
    w_oi = jax.random.uniform(
        kw, (OUT_FEATURES, IN_FEATURES), jnp.float32, minval=-bound, maxval=bound
    )
    b = jax.random.uniform(
        kb, (OUT_FEATURES,), jnp.float32, minval=-bound, maxval=bound
    )
    w = jnp.transpose(w_oi)            # (IN, OUT)
    return w, b.reshape(1, OUT_FEATURES)


if __name__ == "__main__":
    key = jax.random.PRNGKey(0)
    k_x, k_p = jax.random.split(key)

    B = 2
    x = jax.random.normal(k_x, (B, IN_FEATURES), jnp.float32)
    w, b = init_params(k_p)

    out = linear_pallas(x, w, b)
    jax.block_until_ready(out)

    # Cross-check against plain JAX reference.
    ref = x @ w + b
    assert out.shape == (B, OUT_FEATURES)
    assert jnp.allclose(out, ref, atol=1e-5, rtol=1e-5)

    print("KERNEL_OK")
</pallas_src>

<mosaic_0001>
module attributes {stable_mosaic.version = 11 : i64} {
  func.func @linear_kernel(%arg0: i32, %arg1: memref<8x10xf32, #tpu.memory_space<vmem>>, %arg2: memref<10x5xf32, #tpu.memory_space<vmem>>, %arg3: memref<1x5xf32, #tpu.memory_space<vmem>>, %arg4: memref<8x5xf32, #tpu.memory_space<vmem>>) attributes {dimension_semantics = [#tpu.dimension_semantics<parallel>], iteration_bounds = array<i64: 1>, scalar_prefetch = 0 : i64, scratch_operands = 0 : i64, tpu.core_type = #tpu.core_type<tc>, window_params = [{transform_indices = @transform_0, window_bounds = array<i64: 8, 10>}, {pipeline_mode = #tpu.pipeline_mode<synchronous>, transform_indices = @transform_1, window_bounds = array<i64: 10, 5>}, {pipeline_mode = #tpu.pipeline_mode<synchronous>, transform_indices = @transform_2, window_bounds = array<i64: 1, 5>}, {transform_indices = @transform_3, window_bounds = array<i64: 8, 5>}]} {
    %c0 = arith.constant 0 : index
    %c0_0 = arith.constant 0 : index
    %0 = vector.load %arg1[%c0, %c0_0] : memref<8x10xf32, #tpu.memory_space<vmem>>, vector<8x10xf32>
    %c0_1 = arith.constant 0 : index
    %c0_2 = arith.constant 0 : index
    %1 = vector.load %arg2[%c0_1, %c0_2] : memref<10x5xf32, #tpu.memory_space<vmem>>, vector<10x5xf32>
    %cst = arith.constant dense<0.000000e+00> : vector<8x5xf32>
    %2 = tpu.matmul %0, %1, %cst {dimension_numbers = #tpu.dot_dimension_numbers<[1], [0], [0], [1], [0, 0, 1, 1], [], []>} : vector<8x10xf32>, vector<10x5xf32>, vector<8x5xf32> -> vector<8x5xf32>
    %c0_3 = arith.constant 0 : index
    %c0_4 = arith.constant 0 : index
    %3 = vector.load %arg3[%c0_3, %c0_4] : memref<1x5xf32, #tpu.memory_space<vmem>>, vector<1x5xf32>
    %4 = vector.broadcast %3 : vector<1x5xf32> to vector<8x5xf32>
    %5 = arith.addf %2, %4 : vector<8x5xf32>
    %c0_5 = arith.constant 0 : index
    %c0_6 = arith.constant 0 : index
    %6 = vector.load %arg4[%c0_5, %c0_6] : memref<8x5xf32, #tpu.memory_space<vmem>>, vector<8x5xf32>
    tpu.vector_store %arg4[%c0_5, %c0_6], %5 {strides = array<i32>} : memref<8x5xf32, #tpu.memory_space<vmem>>, vector<8x5xf32>,
    return
  }
  func.func @transform_0(%arg0: i32) -> (i32, i32) {
    %c0_i32 = arith.constant 0 : i32
    %c0_i32_0 = arith.constant 0 : i32
    return %arg0, %c0_i32 : i32, i32
  }
  func.func @transform_1(%arg0: i32) -> (i32, i32) {
    %c0_i32 = arith.constant 0 : i32
    %c0_i32_0 = arith.constant 0 : i32
    %c0_i32_1 = arith.constant 0 : i32
    return %c0_i32, %c0_i32_0 : i32, i32
  }
  func.func @transform_2(%arg0: i32) -> (i32, i32) {
    %c0_i32 = arith.constant 0 : i32
    %c0_i32_0 = arith.constant 0 : i32
    %c0_i32_1 = arith.constant 0 : i32
    return %c0_i32, %c0_i32_0 : i32, i32
  }
  func.func @transform_3(%arg0: i32) -> (i32, i32) {
    %c0_i32 = arith.constant 0 : i32
    %c0_i32_0 = arith.constant 0 : i32
    return %arg0, %c0_i32 : i32, i32
  }
}

</mosaic_0001>

<bundles_post_ra>
// kernel: tpu_custom_call.1
= control target key start
LH: loop header
LB: loop body
LE: loop exit
PB: predicated region body
PF: predicated region fallthrough
CT: control target
= control target key end

     0   :  { %8 = vsyncpa [#allocation3], 0  ;;  %v169_v2 = vmov 0.0|0.0   ;;  %vm29_vm0 = vcmask 1041408   ;;  %vm170_vm1 = vmmov 1   ;;  %vm171_vm3 = vmmov 0   ;;  %s220_s0 = inlined_call_operand.vmem [shape: f32[2,10], index: 0, kind: input, shape index: {}]   ;;  %s221_s1 = inlined_call_operand.vmem [shape: f32[10,5], index: 1, kind: input, shape index: {}]   ;;  %s222_s2 = inlined_call_operand.vmem [shape: f32[1,5], index: 2, kind: input, shape index: {}]   ;;  %s223_s3 = inlined_call_operand.hbm [shape: f32[2,5], index: 3, kind: output, shape index: {}]  }
   0x1   :  { %v16_v0 = vld [vmem:[%s221_s1] sm:$0xff]  ;;  %v17_v1 = vld [vmem:[%s221_s1 + $0x8] sm:$0x3]  ;;  %134 = vmatprep.subr.bf16.mxu0 %v169_v2  ;;  %vm136_vm2 = vmpackc.low %vm29_vm0, %vm170_vm1  ;;  %v172_v4 = vmov 0.0   ;;  %vm25_vm4 = vcmask 80896   ;;  %vm103_vm5 = vcmask 39936  }
   0x2   :  { %v135_v3 = vpack.c.bf16 %v17_v1, %v16_v0  ;;  %131 = vmatprep.mubr.msk.f32.mxu0 %vm171_vm3, %v172_v4  ;;  %v15_v5 = vld [vmem:[%s220_s0] sm:$0xff] }
   0x3   :  { %v121_v6 = vld [vmem:[%s222_s2] ss:$0 sm:$0xff] }
   0x4   :  { %137 = vmatpush3.bf16.msk.msra.mxu0 %vm136_vm2, %v135_v3 }
   0x7   :  { %132 = vmatmul.mubr.msk.f32.vlgmr.msra.gmra.mrb[0].mxu0 %vm25_vm4, %v15_v5 }
  0xda   :  { %v99_v7 = vpop.f32.mrb[0].mxu0 }
  0xdb   :  { %v100_v8 = vadd.f32 %v121_v6, %v99_v7  ;;  %v133_v9 = vpop.f32.mrb[1].mxu0 }
  0xdd   :  { %104 = vst.msk [vmem:[#allocation2] sm:$0xff] %vm103_vm5, %v100_v8 }
  0xde   :  { %109 = vsyncadd [#allocation3], 96  ;;  %s173_s1 = smov [#allocation2]  }
  0xdf   :  { %s110_s20 = sshll.u32 %s173_s1, 4  ;;  %s111_s20 = int_to_ptr.vmem [resolvable:$true] %s110_s20 }
  0xe0   :  { %s145_s21 = scalar_lea.vmem %s111_s20, 32  ;;  %s149_s22 = scalar_lea.vmem %s111_s20, 128 }
  0xe1   :  { %p146_p0 = scmp.ne.s32.totalorder %s111_s20, %s145_s21  ;;  %p150_p1 = scmp.lt.s32.totalorder %s111_s20, %s111_s20 }
  0xe2   :  { %p151_p2 = scmp.lt.s32.totalorder %s149_s22, %s145_s21 }
  0xe4   :  { %p152_p3 = por %p151_p2, %p150_p1 }
  0xe6   :  { %p153_p4 = pnand %p152_p3, %p146_p0 }
  0xe8   :  { %156 = shalt.err (!%p153_p4)
}
  0xe9   :  { %s157_s2 = scalar_lea.hbm %s223_s3, 32 }
  0xea   :  { %p158_p5 = scmp.ne.s32.totalorder %s223_s3, %s157_s2  ;;  %p161_p6 = scmp.lt.u32.totalorder %s157_s2, %s223_s3 }
  0xec   :  { %p163_p7 = pnand %p161_p6, %p158_p5 }
  0xee   :  { %166 = shalt.err (!%p163_p7)
}
  0xef   :  { %s174_s28 = smov 32   ;;  %s175_s29 = smov 2  }
  0xf0   :  { %116 = dma.vmem_to_hbm [thread:$0]  %s111_s20, 32, %s223_s3, [#allocation3], %s174_s28, %s174_s28, %s175_s29  }
  0xf1   :  { %167 = dma.done.wait [#allocation3], 128  }
  0xf2   :  { %168 = vsyncadd [#allocation3], 4294967168 }
  0xf3   :  { %120 = vsyncpa [#allocation3], 1 }

</bundles_post_ra>
